<compile_context>
chip_gen: v5e
topology: v5e:2x2
jax: 0.10.0
libtpu: 0.0.40
codegen_flags: <defaults>
</compile_context>

<pallas_src>
import functools

import jax
import jax.numpy as jnp
from jax.experimental import pallas as pl
from jax.experimental.pallas import tpu as pltpu

LATENT_DIM = 20
H1 = 128
H2 = 256
OUT = 62
OUT_PAD = 128            # lane-dense output -> unmasked vector stores

MAX_BATCH_TILE = 4096    # ~22 MiB peak VMEM at this tile; safe on v5e/v6e/v7x
_MIN_SPLIT = 512         # don't split smaller batches across grid steps
_VMEM_LIMIT_BYTES = 48 * 1024 * 1024


def _cdiv(a, b):
    return -(-a // b)


def _round_up(n, m):
    return _cdiv(n, m) * m


def _choose_tile(batch):
    """Batch tile: bpad - batch < tile, >=2 grid steps for mid/large batches."""
    if batch <= _MIN_SPLIT:
        steps = 1
    else:
        steps = max(2, _cdiv(batch, MAX_BATCH_TILE))
    tile = _round_up(_cdiv(batch, steps), 8)
    return min(max(tile, 8), MAX_BATCH_TILE)


def decoder_kernel(x_ref, w1_ref, b1_ref, w2_ref, b2_ref, w3_ref, b3_ref, o_ref):
    # Fused 3-layer MLP: bf16 operands on the MXU, f32 accumulation,
    # elementwise math (ReLU / sigmoid) in f32 on the VPU/EUP.
    x = x_ref[...].astype(jnp.bfloat16)                               # (TB, 20)

    h = jnp.dot(x, w1_ref[...], preferred_element_type=jnp.float32) + b1_ref[...]
    h = jnp.maximum(h, 0.0).astype(jnp.bfloat16)                      # (TB, 128)

    h = jnp.dot(h, w2_ref[...], preferred_element_type=jnp.float32) + b2_ref[...]
    h = jnp.maximum(h, 0.0).astype(jnp.bfloat16)                      # (TB, 256)

    logits = jnp.dot(h, w3_ref[...], preferred_element_type=jnp.float32) + b3_ref[...]
    # sigmoid(z) = 1 / (1 + exp(-z)); exp + approx reciprocal run on the EUP.
    o_ref[...] = pl.reciprocal(1.0 + jnp.exp(-logits), approx=True).astype(o_ref.dtype)


def init_params(key):
    """Deterministic f32 params (PyTorch-Linear-like uniform fan-in bounds),
    stored pre-transposed as (in_features, out_features)."""
    ks = jax.random.split(key, 6)

    def linear(kw, kb, fan_in, fan_out):
        bound = 1.0 / jnp.sqrt(fan_in)
        w = jax.random.uniform(kw, (fan_in, fan_out), jnp.float32, -bound, bound)
        b = jax.random.uniform(kb, (1, fan_out), jnp.float32, -bound, bound)
        return w, b

    w1, b1 = linear(ks[0], ks[1], LATENT_DIM, H1)
    w2, b2 = linear(ks[2], ks[3], H1, H2)
    w3, b3 = linear(ks[4], ks[5], H2, OUT)
    return (w1, b1, w2, b2, w3, b3)


def pack_params(params):
    """f32 params -> bf16 kernel weights (biases stay f32).
    Only W3/b3 get zero-padded columns (62 -> 128); extra columns are inert
    and sliced off after the kernel."""
    w1, b1, w2, b2, w3, b3 = params
    w3p = jnp.zeros((H2, OUT_PAD), jnp.float32).at[:, :OUT].set(w3)
    b3p = jnp.zeros((1, OUT_PAD), jnp.float32).at[:, :OUT].set(b3)
    return (w1.astype(jnp.bfloat16), b1,
            w2.astype(jnp.bfloat16), b2,
            w3p.astype(jnp.bfloat16), b3p)


@functools.partial(jax.jit, static_argnames=("tile_b",))
def _decoder_padded(xp, packed, *, tile_b):
    """xp: (bpad, LATENT_DIM) f32 with bpad % tile_b == 0 -> (bpad, OUT_PAD) f32."""
    w1, b1, w2, b2, w3, b3 = packed
    bpad = xp.shape[0]
    grid = (bpad // tile_b,)

    # Full-array blocks with constant index_map: stay resident in VMEM
    # (Pallas only re-issues the DMA when the block index changes).
    const2d = lambda arr: pl.BlockSpec(arr.shape, lambda i: (0, 0))

    return pl.pallas_call(
        decoder_kernel,
        out_shape=jax.ShapeDtypeStruct((bpad, OUT_PAD), jnp.float32),
        grid=grid,
        in_specs=[
            # Last block dim (20) equals the full array dim -> legal w/o (8,128).
            pl.BlockSpec((tile_b, LATENT_DIM), lambda i: (i, 0)),
            const2d(w1), const2d(b1),
            const2d(w2), const2d(b2),
            const2d(w3), const2d(b3),
        ],
        out_specs=pl.BlockSpec((tile_b, OUT_PAD), lambda i: (i, 0)),
        compiler_params=pltpu.CompilerParams(
            dimension_semantics=("parallel",),          # batch tiles -> 2 TCs on v7x
            vmem_limit_bytes=_VMEM_LIMIT_BYTES),
    )(xp, w1, b1, w2, b2, w3, b3)


def decoder_forward_padded(x, packed_params):
    """Hot-path entry: x (B, 20) f32 -> padded output (bpad, OUT_PAD) f32.
    Consumers that can handle the padded layout should use this and slice
    lazily; the kernel writes rows >= B and columns >= OUT as sigmoid(0)=0.5
    garbage that must be ignored."""
    batch = x.shape[0]
    tile_b = _choose_tile(batch)
    bpad = _round_up(batch, tile_b)
    xp = x if bpad == batch else jnp.pad(x, ((0, bpad - batch), (0, 0)))
    return _decoder_padded(xp, packed_params, tile_b=tile_b), batch


def decoder_forward(x, packed_params):
    """Module-equivalent entry: x (B, LATENT_DIM) f32 -> (B, OUT) f32.
    Note: tile_b is a static jit arg, so wildly varying batch sizes recompile;
    pin a fixed batch/tile in production if that matters."""
    out_pad, batch = decoder_forward_padded(x, packed_params)
    return out_pad[:batch, :OUT]


def reference_forward_packed(x, packed):
    """Pure-JAX reference mirroring the kernel numerics (bf16 ops, f32 accum)."""
    w1, b1, w2, b2, w3, b3 = packed
    xb = x.astype(jnp.bfloat16)
    h = jnp.maximum(jnp.dot(xb, w1, preferred_element_type=jnp.float32) + b1, 0.0)
    h = jnp.maximum(
        jnp.dot(h.astype(jnp.bfloat16), w2, preferred_element_type=jnp.float32) + b2, 0.0)
    logits = jnp.dot(h.astype(jnp.bfloat16), w3, preferred_element_type=jnp.float32) + b3
    return jax.nn.sigmoid(logits)[:, :OUT]


def reference_forward_f32(x, params):
    """Full-precision semantic reference (matches the PyTorch module)."""
    w1, b1, w2, b2, w3, b3 = params
    h = jnp.maximum(x @ w1 + b1, 0.0)
    h = jnp.maximum(h @ w2 + b2, 0.0)
    return jax.nn.sigmoid(h @ w3 + b3)


if __name__ == "__main__":
    key = jax.random.PRNGKey(0)
    k_x, k_p = jax.random.split(key)

    batch = 8
    x = jax.random.normal(k_x, (batch, LATENT_DIM), jnp.float32)
    params = init_params(k_p)
    packed = pack_params(params)

    out = decoder_forward(x, packed)
    out = jax.block_until_ready(out)
    assert out.shape == (batch, OUT), out.shape

    # Check vs. a reference with matching bf16/f32 numerics (only difference:
    # EUP approximate reciprocal in the sigmoid).
    ref_exact = reference_forward_packed(x, packed)
    assert jnp.allclose(out, ref_exact, atol=5e-3, rtol=5e-3), "mismatch vs bf16 reference"

    # Loose check vs. the full-f32 reference (bf16 weight/activation rounding).
    ref_f32 = reference_forward_f32(x, params)
    assert jnp.allclose(out, ref_f32, atol=3e-2, rtol=3e-2), "mismatch vs f32 reference"

    print("KERNEL_OK")
</pallas_src>

<mosaic_0001>
module attributes {stable_mosaic.version = 11 : i64} {
  func.func @decoder_kernel(%arg0: i32, %arg1: memref<8x20xf32, #tpu.memory_space<vmem>>, %arg2: memref<20x128xbf16, #tpu.memory_space<vmem>>, %arg3: memref<1x128xf32, #tpu.memory_space<vmem>>, %arg4: memref<128x256xbf16, #tpu.memory_space<vmem>>, %arg5: memref<1x256xf32, #tpu.memory_space<vmem>>, %arg6: memref<256x128xbf16, #tpu.memory_space<vmem>>, %arg7: memref<1x128xf32, #tpu.memory_space<vmem>>, %arg8: memref<8x128xf32, #tpu.memory_space<vmem>>) attributes {dimension_semantics = [#tpu.dimension_semantics<parallel>], iteration_bounds = array<i64: 1>, scalar_prefetch = 0 : i64, scratch_operands = 0 : i64, tpu.core_type = #tpu.core_type<tc>, window_params = [{transform_indices = @transform_0, window_bounds = array<i64: 8, 20>}, {pipeline_mode = #tpu.pipeline_mode<synchronous>, transform_indices = @transform_1, window_bounds = array<i64: 20, 128>}, {pipeline_mode = #tpu.pipeline_mode<synchronous>, transform_indices = @transform_2, window_bounds = array<i64: 1, 128>}, {pipeline_mode = #tpu.pipeline_mode<synchronous>, transform_indices = @transform_3, window_bounds = array<i64: 128, 256>}, {pipeline_mode = #tpu.pipeline_mode<synchronous>, transform_indices = @transform_4, window_bounds = array<i64: 1, 256>}, {pipeline_mode = #tpu.pipeline_mode<synchronous>, transform_indices = @transform_5, window_bounds = array<i64: 256, 128>}, {pipeline_mode = #tpu.pipeline_mode<synchronous>, transform_indices = @transform_6, window_bounds = array<i64: 1, 128>}, {transform_indices = @transform_7, window_bounds = array<i64: 8, 128>}]} {
    %c0 = arith.constant 0 : index
    %c0_0 = arith.constant 0 : index
    %0 = vector.load %arg1[%c0, %c0_0] : memref<8x20xf32, #tpu.memory_space<vmem>>, vector<8x20xf32>
    %1 = arith.truncf %0 : vector<8x20xf32> to vector<8x20xbf16>
    %c0_1 = arith.constant 0 : index
    %c0_2 = arith.constant 0 : index
    %2 = vector.load %arg2[%c0_1, %c0_2] : memref<20x128xbf16, #tpu.memory_space<vmem>>, vector<20x128xbf16>
    %cst = arith.constant dense<0.000000e+00> : vector<8x128xf32>
    %3 = tpu.matmul %1, %2, %cst {dimension_numbers = #tpu.dot_dimension_numbers<[1], [0], [0], [1], [0, 0, 1, 1], [], []>} : vector<8x20xbf16>, vector<20x128xbf16>, vector<8x128xf32> -> vector<8x128xf32>
    %c0_3 = arith.constant 0 : index
    %c0_4 = arith.constant 0 : index
    %4 = vector.load %arg3[%c0_3, %c0_4] : memref<1x128xf32, #tpu.memory_space<vmem>>, vector<1x128xf32>
    %5 = vector.broadcast %4 : vector<1x128xf32> to vector<8x128xf32>
    %6 = arith.addf %3, %5 : vector<8x128xf32>
    %cst_5 = arith.constant 0.000000e+00 : f32
    %7 = vector.broadcast %cst_5 : f32 to vector<8x128xf32>
    %8 = arith.maximumf %6, %7 : vector<8x128xf32>
    %9 = arith.truncf %8 : vector<8x128xf32> to vector<8x128xbf16>
    %c0_6 = arith.constant 0 : index
    %c0_7 = arith.constant 0 : index
    %10 = vector.load %arg4[%c0_6, %c0_7] : memref<128x256xbf16, #tpu.memory_space<vmem>>, vector<128x256xbf16>
    %cst_8 = arith.constant dense<0.000000e+00> : vector<8x256xf32>
    %11 = tpu.matmul %9, %10, %cst_8 {dimension_numbers = #tpu.dot_dimension_numbers<[1], [0], [0], [1], [0, 0, 1, 1], [], []>} : vector<8x128xbf16>, vector<128x256xbf16>, vector<8x256xf32> -> vector<8x256xf32>
    %c0_9 = arith.constant 0 : index
    %c0_10 = arith.constant 0 : index
    %12 = vector.load %arg5[%c0_9, %c0_10] : memref<1x256xf32, #tpu.memory_space<vmem>>, vector<1x256xf32>
    %13 = vector.broadcast %12 : vector<1x256xf32> to vector<8x256xf32>
    %14 = arith.addf %11, %13 : vector<8x256xf32>
    %cst_11 = arith.constant 0.000000e+00 : f32
    %15 = vector.broadcast %cst_11 : f32 to vector<8x256xf32>
    %16 = arith.maximumf %14, %15 : vector<8x256xf32>
    %17 = arith.truncf %16 : vector<8x256xf32> to vector<8x256xbf16>
    %c0_12 = arith.constant 0 : index
    %c0_13 = arith.constant 0 : index
    %18 = vector.load %arg6[%c0_12, %c0_13] : memref<256x128xbf16, #tpu.memory_space<vmem>>, vector<256x128xbf16>
    %cst_14 = arith.constant dense<0.000000e+00> : vector<8x128xf32>
    %19 = tpu.matmul %17, %18, %cst_14 {dimension_numbers = #tpu.dot_dimension_numbers<[1], [0], [0], [1], [0, 0, 1, 1], [], []>} : vector<8x256xbf16>, vector<256x128xbf16>, vector<8x128xf32> -> vector<8x128xf32>
    %c0_15 = arith.constant 0 : index
    %c0_16 = arith.constant 0 : index
    %20 = vector.load %arg7[%c0_15, %c0_16] : memref<1x128xf32, #tpu.memory_space<vmem>>, vector<1x128xf32>
    %21 = vector.broadcast %20 : vector<1x128xf32> to vector<8x128xf32>
    %22 = arith.addf %19, %21 : vector<8x128xf32>
    %cst_17 = arith.constant 0.000000e+00 : f32
    %23 = vector.broadcast %cst_17 : f32 to vector<8x128xf32>
    %24 = arith.subf %23, %22 : vector<8x128xf32>
    %25 = math.exp %24 : vector<8x128xf32>
    %cst_18 = arith.constant 1.000000e+00 : f32
    %26 = vector.broadcast %cst_18 : f32 to vector<8x128xf32>
    %27 = arith.addf %26, %25 : vector<8x128xf32>
    %28 = tpu.reciprocal %27 {approx = true} : vector<8x128xf32> -> vector<8x128xf32>
    %c0_19 = arith.constant 0 : index
    %c0_20 = arith.constant 0 : index
    %29 = vector.load %arg8[%c0_19, %c0_20] : memref<8x128xf32, #tpu.memory_space<vmem>>, vector<8x128xf32>
    tpu.vector_store %arg8[%c0_19, %c0_20], %28 {strides = array<i32>} : memref<8x128xf32, #tpu.memory_space<vmem>>, vector<8x128xf32>,
    return
  }
  func.func @transform_0(%arg0: i32) -> (i32, i32) {
    %c0_i32 = arith.constant 0 : i32
    %c0_i32_0 = arith.constant 0 : i32
    return %arg0, %c0_i32 : i32, i32
  }
  func.func @transform_1(%arg0: i32) -> (i32, i32) {
    %c0_i32 = arith.constant 0 : i32
    %c0_i32_0 = arith.constant 0 : i32
    %c0_i32_1 = arith.constant 0 : i32
    return %c0_i32, %c0_i32_0 : i32, i32
  }
  func.func @transform_2(%arg0: i32) -> (i32, i32) {
    %c0_i32 = arith.constant 0 : i32
    %c0_i32_0 = arith.constant 0 : i32
    %c0_i32_1 = arith.constant 0 : i32
    return %c0_i32, %c0_i32_0 : i32, i32
  }
  func.func @transform_3(%arg0: i32) -> (i32, i32) {
    %c0_i32 = arith.constant 0 : i32
    %c0_i32_0 = arith.constant 0 : i32
    %c0_i32_1 = arith.constant 0 : i32
    return %c0_i32, %c0_i32_0 : i32, i32
  }
  func.func @transform_4(%arg0: i32) -> (i32, i32) {
    %c0_i32 = arith.constant 0 : i32
    %c0_i32_0 = arith.constant 0 : i32
    %c0_i32_1 = arith.constant 0 : i32
    return %c0_i32, %c0_i32_0 : i32, i32
  }
  func.func @transform_5(%arg0: i32) -> (i32, i32) {
    %c0_i32 = arith.constant 0 : i32
    %c0_i32_0 = arith.constant 0 : i32
    %c0_i32_1 = arith.constant 0 : i32
    return %c0_i32, %c0_i32_0 : i32, i32
  }
  func.func @transform_6(%arg0: i32) -> (i32, i32) {
    %c0_i32 = arith.constant 0 : i32
    %c0_i32_0 = arith.constant 0 : i32
    %c0_i32_1 = arith.constant 0 : i32
    return %c0_i32, %c0_i32_0 : i32, i32
  }
  func.func @transform_7(%arg0: i32) -> (i32, i32) {
    %c0_i32 = arith.constant 0 : i32
    %c0_i32_0 = arith.constant 0 : i32
    return %arg0, %c0_i32 : i32, i32
  }
}

</mosaic_0001>

<bundles_post_ra>
// kernel: _decoder_padded.1
= control target key start
LH: loop header
LB: loop body
LE: loop exit
PB: predicated region body
PF: predicated region fallthrough
CT: control target
= control target key end

     0   :  { %12 = vsyncpa [#allocation3], 0  ;;  %s827_s0 = inlined_call_operand.hbm [shape: f32[8,20], index: 0, kind: input, shape index: {}]   ;;  %s828_s1 = inlined_call_operand.hbm [shape: bf16[20,128], index: 1, kind: input, shape index: {}]   ;;  %s829_s2 = inlined_call_operand.vmem [shape: f32[1,128], index: 2, kind: input, shape index: {}]   ;;  %s830_s3 = inlined_call_operand.hbm [shape: bf16[128,256], index: 3, kind: input, shape index: {}]   ;;  %s831_s4 = inlined_call_operand.vmem [shape: f32[1,256], index: 4, kind: input, shape index: {}]   ;;  %s832_s5 = inlined_call_operand.hbm [shape: bf16[256,128], index: 5, kind: input, shape index: {}]   ;;  %s833_s6 = inlined_call_operand.vmem [shape: f32[1,128], index: 6, kind: input, shape index: {}]   ;;  %s834_s7 = inlined_call_operand.hbm [shape: f32[8,128], index: 7, kind: output, shape index: {}]  }
   0x1   :  { %13 = vsyncpa [#allocation6], 0 }
   0x2   :  { %14 = vsyncpa [#allocation9], 0  ;;  %s31_s26 = sshll.u32 %s828_s1, 4  ;;  %s32_s26 = int_to_ptr.hbm [resolvable:$true] %s31_s26 }
   0x3   :  { %15 = vsyncpa [#allocation4], 0  ;;  %s754_s27 = smov [#allocation5]   ;;  %s21_s8 = sshll.u32 %s827_s0, 4  ;;  %s22_s8 = int_to_ptr.hbm [resolvable:$true] %s21_s8 }
   0x4   :  { %s33_s28 = sshll.u32 %s754_s27, 4  ;;  %s755_s9 = smov 64   ;;  %s34_s28 = int_to_ptr.vmem [resolvable:$true] %s33_s28 }
   0x5   :  { %s756_s10 = smov 4   ;;  %s757_s11 = smov [#allocation2]  }
   0x6   :  { %39 = dma.hbm_to_vmem [thread:$0]  %s32_s26, 192, %s34_s28, [#allocation6], %s755_s9, %s755_s9, %s756_s10  }
   0x7   :  { %s23_s12 = sshll.u32 %s757_s11, 4  ;;  %s46_s15 = sshll.u32 %s830_s3, 4  ;;  %s24_s12 = int_to_ptr.vmem [resolvable:$true] %s23_s12  ;;  %s47_s15 = int_to_ptr.hbm [resolvable:$true] %s46_s15 }
   0x8   :  { %26 = dma.hbm_to_vmem [thread:$0]  %s22_s8, 128, %s24_s12, [#allocation3]  }
   0x9   :  { %s758_s1 = smov [#allocation7]   ;;  %s61_s0 = sshll.u32 %s832_s5, 4  ;;  %s62_s0 = int_to_ptr.hbm [resolvable:$true] %s61_s0 }
   0xa   :  { %s48_s16 = sshll.u32 %s758_s1, 4  ;;  %s759_s19 = smov 128   ;;  %s49_s16 = int_to_ptr.vmem [resolvable:$true] %s48_s16 }
   0xb   :  { %s760_s20 = smov 8   ;;  %s761_s21 = smov [#allocation8]  }
   0xc   :  { %54 = dma.hbm_to_vmem [thread:$0]  %s47_s15, 2048, %s49_s16, [#allocation6], %s759_s19, %s759_s19, %s760_s20  }
   0xd   :  { %s63_s22 = sshll.u32 %s761_s21, 4  ;;  %s64_s22 = int_to_ptr.vmem [resolvable:$true] %s63_s22 }
   0xe   :  { %69 = dma.hbm_to_vmem [thread:$0]  %s62_s0, 2048, %s64_s22, [#allocation9], %s755_s9, %s755_s9, %s756_s10  }
   0xf   :  { %746 = dma.done.wait [#allocation3], 128  }
  0x10   :  { %747 = vsyncadd [#allocation3], 4294967168 }
  0x11   :  { %748 = dma.done.wait [#allocation6], 2240  }
  0x12   :  { %749 = vsyncadd [#allocation6], 4294965056 }
  0x13   :  { %750 = dma.done.wait [#allocation9], 2048  }
  0x14   :  { %751 = vsyncadd [#allocation9], 4294965248  ;;  %v93_v0 = vld [vmem:[#allocation5 + $0x8] sm:$0x3]  ;;  %vm111_vm0 = vcmask 1041408   ;;  %v578_v15 = vld [vmem:[#allocation5] sm:$0xff] }
  0x15   :  { %v103_v1 = vunpack.c.l.b16 %v93_v0  ;;  %v508_v2 = vld [vmem:[#allocation7 + $0x70] sm:$0xf]  ;;  %v594_v3 = vld [vmem:[#allocation7 + $0x74] sm:$0xf0]  ;;  %v593_v4 = vld [vmem:[#allocation7 + $0x74] sm:$0xf] }
  0x16   :  { %v509_v5 = vor.u32 %v594_v3, %v508_v2  ;;  %v510_v6 = vld [vmem:[#allocation7 + $0x78] sm:$0xf0]  ;;  %v500_v7 = vld [vmem:[#allocation7 + $0x60] sm:$0xf]  ;;  %v592_v8 = vld [vmem:[#allocation7 + $0x64] sm:$0xf0] }
  0x17   :  { %v105_v9 = vpack.c.b16 %v103_v1, %v103_v1  ;;  %v513_v10 = vor.u32 %v593_v4, %v510_v6  ;;  %v591_v11 = vld [vmem:[#allocation7 + $0x64] sm:$0xf]  ;;  %v502_v12 = vld [vmem:[#allocation7 + $0x68] sm:$0xf0]  ;;  %v501_v13 = vor.u32 %v592_v8, %v500_v7  ;;  %v492_v17 = vld [vmem:[#allocation7 + $0x50] sm:$0xf] }
  0x18   :  { %232 = vmatpush.bf16.msra.mxu1 %v509_v5  ;;  %v505_v16 = vor.u32 %v591_v11, %v502_v12  ;;  %v590_v18 = vld [vmem:[#allocation7 + $0x54] sm:$0xf0]  ;;  %v89_v19 = vld [vmem:[#allocation2] sm:$0xff]  ;;  %v589_v20 = vld [vmem:[#allocation7 + $0x54] sm:$0xf]  ;;  %vm107_vm1 = vcmask 162816  }
  0x19   :  { %v113_v14 = vsel %vm111_vm0, %v105_v9, 0  ;;  %245 = vmatpush.bf16.msra.mxu2 %v513_v10  ;;  %v494_v21 = vld [vmem:[#allocation7 + $0x58] sm:$0xf0]  ;;  %v493_v22 = vor.u32 %v590_v18, %v492_v17  ;;  %v90_v23 = vpack.c.bf16 %v89_v19, %v89_v19  ;;  %v484_v25 = vld [vmem:[#allocation7 + $0x40] sm:$0xf]  ;;  %v601_v57 = vld [vmem:[#allocation8 + $0x30] sm:$0xff] }
  0x1a   :  { %121 = vmatpush.bf16.msra.mxu0 %v113_v14  ;;  %v497_v24 = vor.u32 %v589_v20, %v494_v21  ;;  %v588_v26 = vld [vmem:[#allocation7 + $0x44] sm:$0xf0]  ;;  %v587_v27 = vld [vmem:[#allocation7 + $0x44] sm:$0xf]  ;;  %v486_v28 = vld [vmem:[#allocation7 + $0x48] sm:$0xf0] }
  0x1b   :  { %v485_v29 = vor.u32 %v588_v26, %v484_v25  ;;  %v489_v30 = vor.u32 %v587_v27, %v486_v28  ;;  %v476_v31 = vld [vmem:[#allocation7 + $0x30] sm:$0xf]  ;;  %v586_v32 = vld [vmem:[#allocation7 + $0x34] sm:$0xf0]  ;;  %v585_v33 = vld [vmem:[#allocation7 + $0x34] sm:$0xf] }
  0x1c   :  { %233 = vmatpush.bf16.msra.mxu1 %v501_v13  ;;  %v478_v34 = vld [vmem:[#allocation7 + $0x38] sm:$0xf0]  ;;  %v477_v35 = vor.u32 %v586_v32, %v476_v31  ;;  %v468_v37 = vld [vmem:[#allocation7 + $0x20] sm:$0xf]  ;;  %v584_v38 = vld [vmem:[#allocation7 + $0x24] sm:$0xf0] }
  0x1d   :  { %246 = vmatpush.bf16.msra.mxu2 %v505_v16  ;;  %v481_v36 = vor.u32 %v585_v33, %v478_v34  ;;  %v583_v39 = vld [vmem:[#allocation7 + $0x24] sm:$0xf]  ;;  %v470_v40 = vld [vmem:[#allocation7 + $0x28] sm:$0xf0]  ;;  %v469_v41 = vor.u32 %v584_v38, %v468_v37  ;;  %v460_v43 = vld [vmem:[#allocation7 + $0x10] sm:$0xf] }
  0x1e   :  { %122 = vmatpush.bf16.msra.mxu0 %v578_v15  ;;  %v473_v42 = vor.u32 %v583_v39, %v470_v40  ;;  %v582_v44 = vld [vmem:[#allocation7 + $0x14] sm:$0xf0]  ;;  %v581_v45 = vld [vmem:[#allocation7 + $0x14] sm:$0xf]  ;;  %v462_v47 = vld [vmem:[#allocation7 + $0x18] sm:$0xf0] }
  0x1f   :  { %v461_v46 = vor.u32 %v582_v44, %v460_v43  ;;  %v465_v48 = vor.u32 %v581_v45, %v462_v47  ;;  %v452_v49 = vld [vmem:[#allocation7] sm:$0xf]  ;;  %v580_v50 = vld [vmem:[#allocation7 + $0x4] sm:$0xf0]  ;;  %v579_v51 = vld [vmem:[#allocation7 + $0x4] sm:$0xf] }
  0x20   :  { %234 = vmatpush.bf16.msra.mxu1 %v493_v22  ;;  %v453_v52 = vor.u32 %v580_v50, %v452_v49  ;;  %v454_v53 = vld [vmem:[#allocation7 + $0x8] sm:$0xf0]  ;;  %v602_v55 = vld [vmem:[#allocation8 + $0x38] sm:$0xff]  ;;  %v609_v58 = vld [vmem:[#allocation8 + $0x70] sm:$0xff]  ;;  %s433_s29 = sshll.u32 %s834_s7, 4  ;;  %s434_s29 = int_to_ptr.hbm [resolvable:$true] %s433_s29 }
  0x21   :  { %449 = vmatmul.msk.bf16.vlgmr.msra.gmra.mxu0 %vm107_vm1, %v90_v23  ;;  %247 = vmatpush.bf16.msra.mxu2 %v497_v24  ;;  %v457_v54 = vor.u32 %v579_v51, %v454_v53  ;;  %v610_v56 = vld [vmem:[#allocation8 + $0x78] sm:$0xff]  ;;  %v600_v59 = vld [vmem:[#allocation8 + $0x28] sm:$0xff]  ;;  %v599_v61 = vld [vmem:[#allocation8 + $0x20] sm:$0xff] }
  0x22   :  { %394 = vmatpush.bf16.msra.mxu3 %v602_v55  ;;  %407 = vmatpush.bf16.msrb.mxu0 %v610_v56  ;;  %v608_v60 = vld [vmem:[#allocation8 + $0x68] sm:$0xff]  ;;  %v607_v62 = vld [vmem:[#allocation8 + $0x60] sm:$0xff]  ;;  %v598_v63 = vld [vmem:[#allocation8 + $0x18] sm:$0xff] }
  0x23   :  { %v606_v0 = vld [vmem:[#allocation8 + $0x58] sm:$0xff]  ;;  %v597_v1 = vld [vmem:[#allocation8 + $0x10] sm:$0xff]  ;;  %v620_v2 = vld [vmem:[%s829_s2] ss:$0 sm:$0xff] }
  0x24   :  { %235 = vmatpush.bf16.msra.mxu1 %v485_v29  ;;  %v596_v8 = vld [vmem:[#allocation8 + $0x8] sm:$0xff]  ;;  %v605_v9 = vld [vmem:[#allocation8 + $0x50] sm:$0xff]  ;;  %v595_v10 = vld [vmem:[#allocation8] sm:$0xff] }
  0x25   :  { %248 = vmatpush.bf16.msra.mxu2 %v489_v30  ;;  %v604_v11 = vld [vmem:[#allocation8 + $0x48] sm:$0xff]  ;;  %v603_v12 = vld [vmem:[#allocation8 + $0x40] sm:$0xff] }
  0x26   :  { %395 = vmatpush.bf16.msra.mxu3 %v601_v57  ;;  %408 = vmatpush.bf16.msrb.mxu0 %v609_v58  ;;  %v146_v13 = vld [vmem:[%s831_s4] sm:$0x3]  ;;  %s762_s4 = smov [#allocation10]  }
  0x27   :  { %v148_v14 = vperm.slane %v146_v13, 0  ;;  %v149_v18 = vperm.slane %v146_v13, 1  ;;  %v621_v26 = vld [vmem:[%s833_s6] ss:$0 sm:$0xff]  ;;  %s431_s26 = sshll.u32 %s762_s4, 4  ;;  %s432_s26 = int_to_ptr.vmem [resolvable:$true] %s431_s26 }
  0x28   :  { %236 = vmatpush.bf16.msra.mxu1 %v477_v35 }
  0x29   :  { %249 = vmatpush.bf16.msra.mxu2 %v481_v36 }
  0x2a   :  { %396 = vmatpush.bf16.msra.mxu3 %v600_v59  ;;  %409 = vmatpush.bf16.msrb.mxu0 %v608_v60 }
  0x2c   :  { %237 = vmatpush.bf16.msra.mxu1 %v469_v41 }
  0x2d   :  { %250 = vmatpush.bf16.msra.mxu2 %v473_v42 }
  0x2e   :  { %397 = vmatpush.bf16.msra.mxu3 %v599_v61  ;;  %410 = vmatpush.bf16.msrb.mxu0 %v607_v62 }
  0x30   :  { %238 = vmatpush.bf16.msra.mxu1 %v461_v46 }
  0x31   :  { %251 = vmatpush.bf16.msra.mxu2 %v465_v48 }
  0x32   :  { %398 = vmatpush.bf16.msra.mxu3 %v598_v63  ;;  %411 = vmatpush.bf16.msrb.mxu0 %v606_v0 }
  0x34   :  { %239 = vmatpush.bf16.msra.mxu1 %v453_v52 }
  0x35   :  { %252 = vmatpush.bf16.msra.mxu2 %v457_v54 }
  0x36   :  { %399 = vmatpush.bf16.msra.mxu3 %v597_v1  ;;  %412 = vmatpush.bf16.msrb.mxu0 %v605_v9 }
  0x3a   :  { %400 = vmatpush.bf16.msra.mxu3 %v596_v8  ;;  %413 = vmatpush.bf16.msrb.mxu0 %v604_v11 }
  0x3e   :  { %401 = vmatpush.bf16.msra.mxu3 %v595_v10  ;;  %414 = vmatpush.bf16.msrb.mxu0 %v603_v12 }
  0x9e   :  { %v124_v3 = vpop.f32.mrf.mxu0 }
  0x9f   :  { %v125_v4 = vadd.f32 %v620_v2, %v124_v3 }
  0xa1   :  { %v128_v5 = vmax.f32 %v125_v4, 0.0 }
  0xa3   :  { %v129_v6 = vpack.c.bf16 %v128_v5, %v128_v5 }
  0xa5   :  { %240 = vmatmul.bf16.vlgmr.msra.gmra.mxu1 %v129_v6  ;;  %253 = vmatmul.bf16.vlgmr.msra.gmra.mxu2 %v129_v6 }
  0xa6   :  { %v126_v7 = vpop.f32.mrf.mxu0 }
 0x122   :  { %v241_v15 = vpop.f32.mrf.mxu1 }
 0x123   :  { %v242_v16 = vadd.f32 %v241_v15, %v148_v14 }
 0x125   :  { %v258_v17 = vmax.f32 %v242_v16, 0.0 }
 0x127   :  { %v260_v19 = vpack.c.bf16 %v258_v17, %v258_v17 }
 0x128   :  { %v254_v20 = vpop.f32.mrf.mxu2 }
 0x129   :  { %v255_v21 = vadd.f32 %v254_v20, %v149_v18  ;;  %402 = vmatmul.bf16.vlgmr.msra.gmra.mxu3 %v260_v19 }
 0x12a   :  { %v243_v22 = vpop.f32.mrf.mxu1 }
 0x12b   :  { %v259_v23 = vmax.f32 %v255_v21, 0.0 }
 0x12d   :  { %v261_v24 = vpack.c.bf16 %v259_v23, %v259_v23 }
 0x12f   :  { %415 = vmatmul.bf16.vlgmr.msrb.gmra.mxu0 %v261_v24 }
 0x130   :  { %v256_v25 = vpop.f32.mrf.mxu2 }
 0x1ac   :  { %v403_v27 = vpop.f32.mrf.mxu3  ;;  %v416_v28 = vpop.f32.mrf.mxu0 }
 0x1ad   :  { %v404_v29 = vadd.f32 %v621_v26, %v403_v27 }
 0x1af   :  { %v417_v30 = vadd.f32 %v416_v28, %v404_v29 }
 0x1b1   :  { %v420_v31 = vsub.f32 0.0, %v417_v30 }
 0x1b3   :  { %v421_v32 = vmul.f32 1.442695, %v420_v31 }
 0x1b4   :  { %v405_v33 = vpop.f32.mrf.mxu3  ;;  %v418_v34 = vpop.f32.mrf.mxu0 }
 0x1b5   :  { %622 = vpow2.f32 %v421_v32 }
 0x1bb   :  { %v623_v35 = vpop.eup %622 }
 0x1bc   :  { %v423_v36 = vadd.f32 1.0, %v623_v35 }
 0x1be   :  { %624 = vrcp.f32 %v423_v36 }
 0x1c4   :  { %v625_v37 = vpop.eup %624 }
 0x1c5   :  { %425 = vst [vmem:[#allocation10] sm:$0xff] %v625_v37 }
 0x1c6   :  { %436 = dma.vmem_to_hbm [thread:$0]  %s432_s26, 128, %s434_s29, [#allocation4]  }
 0x1c7   :  { %752 = dma.done.wait [#allocation4], 128  }
 0x1c8   :  { %753 = vsyncadd [#allocation4], 4294967168 }
 0x1c9   :  { %441 = vsyncpa [#allocation3], 1 }
 0x1ca   :  { %442 = vsyncpa [#allocation6], 1 }
 0x1cb   :  { %443 = vsyncpa [#allocation9], 1 }
 0x1cc   :  { %444 = vsyncpa [#allocation4], 1 }

</bundles_post_ra>
